<compile_context>
chip_gen: v5e
topology: v5e:2x2
jax: 0.10.0
libtpu: 0.0.40
codegen_flags: <defaults>
</compile_context>

<pallas_src>
import jax
import jax.numpy as jnp
from jax.experimental import pallas as pl
from jax.experimental.pallas import tpu as pltpu


def _upsample_kernel(x_ref, sel_ref, o_ref):
    # x_ref:   (B, TH, W)                 batched (n, c) input rows
    # sel_ref: (W, stride*stride*W)       one-hot nearest-neighbor selector
    # o_ref:   (B, TH, stride*stride*W)   merged (stride_h, Wo) output rows
    b, th, w = x_ref.shape
    ow = o_ref.shape[-1]

    x2 = x_ref[...].reshape(b * th, w)                      # leading-dim merge only
    t = jnp.dot(x2, sel_ref[...],                           # MXU: select+replicate
                preferred_element_type=jnp.float32)
    o_ref[...] = t.astype(o_ref.dtype).reshape(b, th, ow)   # leading-dim split only


def _round_up(x, m):
    return (x + m - 1) // m * m


def _tile_bytes(shape, itemsize):
    # Conservative VMEM footprint: last two dims padded to the (8, 128) vreg tile.
    *lead, s2, s1 = shape
    n = 1
    for d in lead:
        n *= d
    return n * _round_up(s2, 8) * _round_up(s1, 128) * itemsize


def _pick_tiles(nc, h, w, ow, itemsize, budget=12 * 1024 * 1024):
    """Pick (B, TH): batch of (n, c) slices and H tile per grid step.

    Keeps the double-buffered in+out working set under `budget` and tries to
    keep >= 2 grid steps so both v7x TensorCores get work via 'parallel' axes.
    """
    sel_bytes = 2 * _tile_bytes((w, ow), itemsize)          # resident selector
    left = max(budget - sel_bytes, 2 * 1024 * 1024)

    def footprint(b, th):
        return 2 * (_tile_bytes((b, th, w), itemsize)
                    + _tile_bytes((b, th, ow), itemsize))

    # H tile: whole H if B=1 fits; else the largest multiple-of-8 divisor that fits.
    th = h
    if footprint(1, h) > left:
        cands = [d for d in range(8, h, 8) if h % d == 0]
        fitting = [d for d in cands if footprint(1, d) <= left]
        if fitting:
            th = max(fitting)
        elif cands:
            th = min(cands)                                  # best effort

    # Batch: largest divisor of nc that fits; cap to nc//2 if H is not tiled so
    # the grid still has >= 2 steps for megacore sharding.
    b = 1
    cap = nc if (nc == 1 or h // th >= 2) else max(1, nc // 2)
    for d in range(1, cap + 1):
        if nc % d == 0 and footprint(d, th) <= left:
            b = d
    return b, th


def down_up(x, stride):
    """Pallas equivalent of DownUp(stride).forward(x) for 4-D NCHW input."""
    stride = int(stride)
    N, C, H, W = x.shape
    Ho, Wo = H * stride, W * stride
    NC = N * C
    OW = stride * Wo                       # merged (stride_h, Wo) last dim

    # One-hot selector: column k = r*Wo + wo picks input column wo // stride.
    # Kept in the input dtype (bf16 stays bf16 into the MXU); exactly one
    # nonzero (1.0) per column with f32 accumulation -> bit-exact copy.
    k = jnp.arange(OW)
    src = (k % Wo) // stride
    sel = (jnp.arange(W)[:, None] == src[None, :]).astype(x.dtype)      # (W, OW)

    xf = x.reshape(NC, H, W)

    B, TH = _pick_tiles(NC, H, W, OW, jnp.dtype(x.dtype).itemsize)
    grid = (NC // B, H // TH)

    out = pl.pallas_call(
        _upsample_kernel,
        out_shape=jax.ShapeDtypeStruct((NC, H, OW), x.dtype),
        grid_spec=pltpu.PrefetchScalarGridSpec(
            num_scalar_prefetch=0,
            grid=grid,
            in_specs=[
                pl.BlockSpec((B, TH, W), lambda i, j: (i, j, 0)),
                pl.BlockSpec((W, OW), lambda i, j: (0, 0)),
            ],
            out_specs=pl.BlockSpec((B, TH, OW), lambda i, j: (i, j, 0)),
        ),
        compiler_params=pltpu.CompilerParams(
            dimension_semantics=("parallel", "parallel"),
            vmem_limit_bytes=48 * 1024 * 1024,
        ),
    )(xf, sel)

    # (NC, H, stride*Wo) -> (N, C, H, stride, Wo) -> (N, C, Ho, Wo):
    # adjacent-dim splits/merges only => free reshape, no transpose.
    return out.reshape(N, C, Ho, Wo)


if __name__ == "__main__":
    stride = 2
    key = jax.random.PRNGKey(0)
    x = jax.random.normal(key, (2, 4, 16, 16), dtype=jnp.float32)

    y = down_up(x, stride)
    y = jax.block_until_ready(y)

    # Reference: nearest-neighbor upsample (matches F.interpolate default mode).
    ref = jnp.repeat(jnp.repeat(x, stride, axis=2), stride, axis=3)
    assert y.shape == ref.shape
    assert jnp.array_equal(y, ref)

    print("KERNEL_OK")
</pallas_src>

<mosaic_0001>
module attributes {stable_mosaic.version = 11 : i64} {
  func.func @_upsample_kernel(%arg0: i32, %arg1: i32, %arg2: memref<4x16x16xf32, #tpu.memory_space<vmem>>, %arg3: memref<16x64xf32, #tpu.memory_space<vmem>>, %arg4: memref<4x16x64xf32, #tpu.memory_space<vmem>>) attributes {dimension_semantics = [#tpu.dimension_semantics<parallel>, #tpu.dimension_semantics<parallel>], iteration_bounds = array<i64: 2, 1>, scalar_prefetch = 0 : i64, scratch_operands = 0 : i64, tpu.core_type = #tpu.core_type<tc>, window_params = [{transform_indices = @transform_0, window_bounds = array<i64: 4, 16, 16>}, {pipeline_mode = #tpu.pipeline_mode<synchronous>, transform_indices = @transform_1, window_bounds = array<i64: 16, 64>}, {transform_indices = @transform_2, window_bounds = array<i64: 4, 16, 64>}]} {
    %c0 = arith.constant 0 : index
    %c0_0 = arith.constant 0 : index
    %c0_1 = arith.constant 0 : index
    %0 = vector.load %arg2[%c0, %c0_0, %c0_1] : memref<4x16x16xf32, #tpu.memory_space<vmem>>, vector<4x16x16xf32>
    %1 = vector.shape_cast %0 : vector<4x16x16xf32> to vector<64x16xf32>
    %c0_2 = arith.constant 0 : index
    %c0_3 = arith.constant 0 : index
    %2 = vector.load %arg3[%c0_2, %c0_3] : memref<16x64xf32, #tpu.memory_space<vmem>>, vector<16x64xf32>
    %cst = arith.constant dense<0.000000e+00> : vector<64x64xf32>
    %3 = tpu.matmul %1, %2, %cst {dimension_numbers = #tpu.dot_dimension_numbers<[1], [0], [0], [1], [0, 0, 1, 1], [], []>} : vector<64x16xf32>, vector<16x64xf32>, vector<64x64xf32> -> vector<64x64xf32>
    %4 = vector.shape_cast %3 : vector<64x64xf32> to vector<4x16x64xf32>
    %c0_4 = arith.constant 0 : index
    %c0_5 = arith.constant 0 : index
    %c0_6 = arith.constant 0 : index
    %5 = vector.load %arg4[%c0_4, %c0_5, %c0_6] : memref<4x16x64xf32, #tpu.memory_space<vmem>>, vector<4x16x64xf32>
    tpu.vector_store %arg4[%c0_4, %c0_5, %c0_6], %4 {strides = array<i32>} : memref<4x16x64xf32, #tpu.memory_space<vmem>>, vector<4x16x64xf32>,
    return
  }
  func.func @transform_0(%arg0: i32, %arg1: i32) -> (i32, i32, i32) {
    %c0_i32 = arith.constant 0 : i32
    %c0_i32_0 = arith.constant 0 : i32
    return %arg0, %arg1, %c0_i32 : i32, i32, i32
  }
  func.func @transform_1(%arg0: i32, %arg1: i32) -> (i32, i32) {
    %c0_i32 = arith.constant 0 : i32
    %c0_i32_0 = arith.constant 0 : i32
    %c0_i32_1 = arith.constant 0 : i32
    return %c0_i32, %c0_i32_0 : i32, i32
  }
  func.func @transform_2(%arg0: i32, %arg1: i32) -> (i32, i32, i32) {
    %c0_i32 = arith.constant 0 : i32
    %c0_i32_0 = arith.constant 0 : i32
    return %arg0, %arg1, %c0_i32 : i32, i32, i32
  }
}

</mosaic_0001>

<bundles_post_ra>
// kernel: tpu_custom_call.1
= control target key start
LH: loop header
LB: loop body
LE: loop exit
PB: predicated region body
PF: predicated region fallthrough
CT: control target
= control target key end

     0   :  { %7 = vsyncpa [#allocation3], 0  ;;  %s862_s0 = inlined_call_operand.hbm [shape: f32[8,16,16], index: 0, kind: input, shape index: {}]   ;;  %s863_s1 = inlined_call_operand.hbm [shape: f32[16,64], index: 1, kind: input, shape index: {}]   ;;  %s864_s2 = inlined_call_operand.hbm [shape: f32[8,16,64], index: 2, kind: output, shape index: {}]  }
   0x1   :  { %9 = vsyncpa [#allocation3 + $0x1], 0 }
   0x2   :  { %10 = vsyncpa [#allocation6], 0 }
   0x3   :  { %11 = vsyncpa [#allocation4], 0 }
   0x4   :  { %13 = vsyncpa [#allocation4 + $0x1], 0  ;;  %s687_s9 = smov 0   ;;  %s689_s10 = smov 0  }
   0x5   :  { %s691_s11 = smov 0   ;;  %s693_s12 = smov 0  }
   0x6   :  { %s695_s13 = smov 0   ;;  %s697_s14 = smov 0  }
   0x7 LB: > { %s405_s15 = sadd.s32 4294967295, %s665_s14   ;;  %s406_s16 = sadd.s32 4294967294, %s665_s14   ;;  %s665_s14 = sphi %s697_s14, %s19_s14   ;;  %s661_s13 = sphi %s695_s13, %s876_s13   ;;  %s657_s12 = sphi %s693_s12, %s875_s12   ;;  %s653_s11 = sphi %s691_s11, %s874_s11   ;;  %s649_s10 = sphi %s689_s10, %s873_s10   ;;  %s645_s9 = sphi %s687_s9, %s872_s9  }
   0x8   : > { %p53_p0 = scmp.ne.s32.totalorder %s649_s10, %s645_s9  ;;  %p721_p1 = scmp.eq.s32.totalorder %s405_s15, 0 }
   0x9   : > { %p725_p2 = scmp.eq.s32.totalorder %s405_s15, 1  ;;  %p106_p3 = scmp.eq.s32.totalorder %s406_s16, 1 }
   0xa   : > { %p731_p4 = por %p721_p1, %p53_p0  ;;  %p407_p5 = scmp.ge.s32.totalorder %s665_s14, 1 }
   0xb   : > { %p736_p6 = por %p106_p3, %p53_p0  ;;  %p113_p7 = scmp.lt.s32.totalorder %s665_s14, 3 }
   0xc   : > { %s124_s23 = sshll.u32 %s863_s1, 4  ;;  %s667_s25 = smov [#allocation5]   ;;  %s125_s23 = int_to_ptr.hbm [resolvable:$true] %s124_s23 }
   0xd   : > { %p744_p8 = pnand %p407_p5, %p113_p7  ;;  %s126_s26 = sshll.u32 %s667_s25, 4  ;;  %s127_s26 = int_to_ptr.vmem [resolvable:$true] %s126_s26 }
   0xe   : > { %p409_p11 = scmp.ge.s32.totalorder %s665_s14, 2  ;;  %s668_s27 = smov 128  }
   0xf   : > { %p450_p9 = pneg %p744_p8  ;;  %s669_s28 = smov 8  }
  0x10   : > { %s31_s29 = sadd.s32 1, %s661_s13  ;;  %s40_s30 = sadd.s32 1, %s653_s11 }
  0x11   : > { %p451_p10 = pnand %p450_p9, %p721_p1  ;;  %p33_p12 = scmp.ge.s32.totalorder %s31_s29, 2 }
  0x12   : > { %p47_p13 = scmp.ne.s32.totalorder %s653_s11, %s649_s10  ;;  %p48_p0 = scmp.eq.s32.totalorder %s665_s14, 0 }
  0x13   : > { %453 = dma.hbm_to_vmem [thread:$0]  (!%p451_p10), %s125_s23, 256, %s127_s26, [#allocation6], %s668_s27, %s668_s27, %s669_s28  }
  0x14   : > { %s878_s29 = smov (%p33_p12, %s31_s29), 0  ;;  %p763_p3 = por %p48_p0, %p47_p13 }
  0x15   : > { %p769_p5 = por %p725_p2, %p47_p13  ;;  %s35_s5 = ssub.s32 %s661_s13, %s878_s29 }
  0x16   : > { %p463_p7 = scmp.lt.s32.totalorder %s665_s14, 2  ;;  %p38_p9 = scmp.eq.s32.totalorder %s35_s5, 0 }
  0x17   : > { %s140_s6 = sand.u32 1, %s653_s11   ;;  %s433_s15 = sshll.u32 %s661_s13, 6 }
  0x18   : > { %s410_s7 = sshll.u32 %s140_s6, 6  ;;  %s152_s22 = scalar_lea.hbm %s862_s0, %s433_s15 }
  0x19   : > { %s778_s8 = scalar_select %p38_p9, %s653_s11, %s40_s30  }
  0x1a   : > { %s144_s23 = scalar_lea.vmem [#allocation2], %s410_s7  ;;  %s153_s18 = sshll.u32 %s152_s22, 4  ;;  %s154_s18 = int_to_ptr.hbm [resolvable:$true] %s153_s18 }
  0x1b   : > { %s155_s25 = sshll.u32 %s144_s23, 4  ;;  %p455_p2 = pnand %p463_p7, %p763_p3  ;;  %s156_s25 = int_to_ptr.vmem [resolvable:$true] %s155_s25 }
  0x1c   : > { %s141_s26 = scalar_lea.sflag [#allocation3], %s140_s6  ;;  %167 = sbr.rel (%p744_p8) target bundleno = 185 (0xb9), region = 28 }
  0x1d   : > { %457 = dma.hbm_to_vmem [thread:$0]  (!%p455_p2), %s154_s18, 1024, %s156_s25, %s141_s26, %s668_s27, %s668_s27, %s669_s28  }
  0x1e   : > { %s792_s30 = sand.u32 (!%p744_p8), 1, %s649_s10  }
  0x1f   : > { %s415_s5 = sshll.u32 (!%p744_p8), %s792_s30, 6  ;;  %s170_s7 = scalar_lea.sflag (!%p744_p8), [#allocation3], %s792_s30 }
  0x20   : > { %s173_s3 = scalar_lea.vmem (!%p744_p8), [#allocation2], %s415_s5 }
  0x21   : > { %632 = dma.done.wait (%p731_p4), %s170_s7, 1024  }
  0x22   : > { %634 = vsyncadd (%p731_p4), %s170_s7, 4294966272 }
  0x23   : > { %636 = dma.done.wait (%p721_p1), [#allocation6], 256  }
  0x24   : > { %638 = vsyncadd (%p721_p1), [#allocation6], 4294967040  ;;  %v213_v0 = vld [vmem:[#allocation5 + $0x8] sm:$0xff]  ;;  %v212_v1 = vld [vmem:[#allocation5] sm:$0xff]  ;;  %vm214_vm0 = vcmask 130048   ;;  %vm280_vm1 = vcmask 523264  }
  0x25   : > { %437 = vmatpush.msra.mxu2 %v213_v0  ;;  %438 = vmatpush.msra.mxu3 %v213_v0  ;;  %v208_v2 = vld [vmem:[%s173_s3 + $0x20] sm:$0xff]  ;;  %v210_v3 = vld [vmem:[%s173_s3 + $0x30] sm:$0xff]  ;;  %v209_v6 = vld [vmem:[%s173_s3 + $0x28] sm:$0xff]  ;;  %s199_s17 = scalar_lea.vmem [#allocation7], %s415_s5  ;;  %s435_s19 = sshll.u32 %s657_s12, 6 }
  0x26   : > { %253 = vmatpush.msra.mxu0 %v213_v0  ;;  %436 = vmatpush.msra.mxu1 %v213_v0  ;;  %v204_v4 = vld [vmem:[%s173_s3] sm:$0xff]  ;;  %v206_v5 = vld [vmem:[%s173_s3 + $0x10] sm:$0xff]  ;;  %v211_v7 = vld [vmem:[%s173_s3 + $0x38] sm:$0xff]  ;;  %s304_s28 = scalar_lea.hbm %s864_s2, %s435_s19  ;;  %s305_s6 = sshll.u32 %s199_s17, 4  ;;  %s306_s6 = int_to_ptr.vmem [resolvable:$true] %s305_s6 }
  0x27   : > { %440 = vmatpush.msra.mxu2 %v212_v1  ;;  %441 = vmatpush.msra.mxu3 %v212_v1  ;;  %v205_v8 = vld [vmem:[%s173_s3 + $0x8] sm:$0xff]  ;;  %v207_v9 = vld [vmem:[%s173_s3 + $0x18] sm:$0xff]  ;;  %s307_s15 = sshll.u32 %s304_s28, 4  ;;  %s290_s12 = scalar_lea.sflag [#allocation4], %s792_s30  ;;  %s308_s15 = int_to_ptr.hbm [resolvable:$true] %s307_s15 }
  0x28   : > { %422 = vmatmul.msk.f32.vlgmr.msra.gmra.mxu2 %vm214_vm0, %v208_v2  ;;  %424 = vmatmul.msk.f32.vlgmr.msra.gmra.mxu3 %vm214_vm0, %v210_v3  ;;  %s593_s16 = sshra.s32 %s308_s15, 4  ;;  %s599_s25 = scalar_lea.hbm %s864_s2, 128  ;;  %s594_s16 = int_to_ptr.hbm [resolvable:$true] %s593_s16 }
  0x29   : > { %254 = vmatpush.msra.mxu0 %v212_v1  ;;  %439 = vmatpush.msra.mxu1 %v212_v1  ;;  %s595_s21 = scalar_lea.hbm %s594_s16, 64  ;;  %p600_p10 = scmp.lt.s32.totalorder %s594_s16, %s864_s2 }
  0x2a   : > { %418 = vmatmul.msk.f32.vlgmr.msra.gmra.mxu0 %vm214_vm0, %v204_v4  ;;  %420 = vmatmul.msk.f32.vlgmr.msra.gmra.mxu1 %vm214_vm0, %v206_v5  ;;  %p596_p1 = scmp.ne.s32.totalorder %s594_s16, %s595_s21  ;;  %p601_p12 = scmp.lt.s32.totalorder %s599_s25, %s595_s21 }
  0x2c   : > { %p597_p4 = pnand %p596_p1, %p769_p5  ;;  %p602_p13 = por %p601_p12, %p600_p10 }
  0x2e   : > { %p598_p8 = pneg %p597_p4 }
  0x30   : > { %423 = vmatmul.msk.f32.gmra.mxu2 %vm214_vm0, %v209_v6  ;;  %425 = vmatmul.msk.f32.gmra.mxu3 %vm214_vm0, %v211_v7  ;;  %p603_p0 = pnand %p602_p13, %p598_p8 }
  0x32   : > { %419 = vmatmul.msk.f32.gmra.mxu0 %vm214_vm0, %v205_v8  ;;  %421 = vmatmul.msk.f32.gmra.mxu1 %vm214_vm0, %v207_v9 }
  0xa7   : > { %v256_v10 = vpop.f32.mrf.mxu0  ;;  %v262_v11 = vpop.f32.mrf.mxu1 }
  0xa8   : > { %281 = vst.msk [vmem:[%s199_s17] sm:$0xff] %vm280_vm1, %v256_v10 }
  0xa9   : > { %283 = vst.msk [vmem:[%s199_s17 + $0x10] sm:$0xff] %vm280_vm1, %v262_v11 }
  0xab   : > { %v268_v12 = vpop.f32.mrf.mxu2  ;;  %v274_v13 = vpop.f32.mrf.mxu3 }
  0xac   : > { %285 = vst.msk [vmem:[%s199_s17 + $0x20] sm:$0xff] %vm280_vm1, %v268_v12 }
  0xad   : > { %287 = vst.msk [vmem:[%s199_s17 + $0x30] sm:$0xff] %vm280_vm1, %v274_v13 }
  0xaf   : > { %v259_v14 = vpop.f32.mrf.mxu0  ;;  %v265_v15 = vpop.f32.mrf.mxu1 }
  0xb0   : > { %282 = vst.msk [vmem:[%s199_s17 + $0x8] sm:$0xff] %vm280_vm1, %v259_v14 }
  0xb1   : > { %284 = vst.msk [vmem:[%s199_s17 + $0x18] sm:$0xff] %vm280_vm1, %v265_v15 }
  0xb3   : > { %v271_v16 = vpop.f32.mrf.mxu2  ;;  %v277_v17 = vpop.f32.mrf.mxu3 }
  0xb4   : > { %286 = vst.msk [vmem:[%s199_s17 + $0x28] sm:$0xff] %vm280_vm1, %v271_v16 }
  0xb5   : > { %288 = vst.msk [vmem:[%s199_s17 + $0x38] sm:$0xff] %vm280_vm1, %v277_v17 }
  0xb6   : > { %606 = shalt.err (!%p603_p0)
}
  0xb7   : > { %s670_s30 = smov 128   ;;  %s671_s5 = smov 8  }
  0xb8   : > { %448 = dma.vmem_to_hbm [thread:$0]  (%p769_p5), %s306_s6, 1024, %s308_s15, %s290_s12, %s670_s30, %s670_s30, %s671_s5  }
  0xb9 PF: > { %s322_s7 = sand.u32 1, %s645_s9   ;;  %p459_p3 = pnand %p409_p11, %p736_p6 }
  0xba   : > { %s323_s3 = scalar_lea.sflag [#allocation4], %s322_s7 }
  0xbb   : > { %p460_p7 = pneg %p459_p3 }
  0xbd   : > { %640 = dma.done.wait (%p460_p7), %s323_s3, 1024  }
  0xbe   : > { %642 = vsyncadd (%p460_p7), %s323_s3, 4294966272  ;;  %s19_s14 = sadd.s32 1, %s665_s14   ;;  %s872_s9 = smov %s649_s10 }
  0xbf   : > { %p16_p9 = scmp.ge.s32.totalorder %s19_s14, 4   ;;  %s873_s10 = smov %s653_s11 }
  0xc0   : > { %s874_s11 = smov %s778_s8  ;;  %s875_s12 = smov %s661_s13 }
  0xc1   : > { %s876_s13 = smov %s878_s29  ;;  %18 = sbr.rel (!%p16_p9) target bundleno = 7 (0x7), region = 77 }
  0xc6   :  { %329 = vsyncpa [#allocation3], 1 }
  0xc7   :  { %331 = vsyncpa [#allocation3 + $0x1], 1 }
  0xc8   :  { %332 = vsyncpa [#allocation6], 1 }
  0xc9   :  { %333 = vsyncpa [#allocation4], 1 }
  0xca   :  { %335 = vsyncpa [#allocation4 + $0x1], 1 }

</bundles_post_ra>
